<compile_context>
chip_gen: v6e
topology: v6e:2x2x1
jax: 0.10.0
libtpu: 0.0.40
codegen_flags: <defaults>
</compile_context>

<pallas_src>
import functools

import jax
import jax.numpy as jnp
from jax.experimental import pallas as pl
from jax.experimental.pallas import tpu as pltpu


def _classifier_kernel(reps_ref, probes_ref, w1a_ref, w1b_ref, b1_ref,
                       w2_ref, b2_ref, logits_ref):
    # Layer 1: split contraction (reps/probes are never concatenated in HBM).
    # Operands are bf16, accumulation is f32 on the MXU.
    h = jnp.dot(reps_ref[...], w1a_ref[...], preferred_element_type=jnp.float32)
    h = h + jnp.dot(probes_ref[...], w1b_ref[...],
                    preferred_element_type=jnp.float32)
    # Bias add + sigmoid in f32 (v5e has no bf16 VPU/EUP).
    h = jax.nn.sigmoid(h + b1_ref[...])          # b1 is (1, H), broadcasts over rows
    # Dropout is identity at inference time.
    # TODO(synk): train-mode dropout (random Bernoulli mask) not modeled.

    # Layer 2: compact (tn, L) output block — L equals the full array dim, so
    # this block shape is legal and writeback moves only real data.
    logits = jnp.dot(h.astype(w2_ref.dtype), w2_ref[...],
                     preferred_element_type=jnp.float32)
    logits_ref[...] = (logits + b2_ref[...]).astype(logits_ref.dtype)


def _round_up8(x):
    return ((x + 7) // 8) * 8


def _spec(block_shape, index_map, depth):
    """BlockSpec with optional extra pipeline depth (fallback = default 2)."""
    if depth <= 2:
        return pl.BlockSpec(block_shape, index_map)
    try:
        return pl.BlockSpec(block_shape, index_map, pipeline_mode=pl.Buffered(depth))
    except Exception:  # older jax without pipeline_mode support
        return pl.BlockSpec(block_shape, index_map)


@functools.partial(jax.jit, static_argnames=("tile_n",))
def deeper_classifier_forward(representations, probes, w1, b1, w2, b2,
                              *, tile_n=2048):
    """representations: (N, S), probes: (N, P).
    w1: (S+P, H), b1: (H,), w2: (H, L), b2: (L,).
    Returns (logits (N, L) f32, predicted (N,) int32)."""
    n, s = representations.shape
    _, p = probes.shape
    hdim = w1.shape[1]
    l = w2.shape[1]

    # bf16 matmul operands.  In production the caller should hand in bf16
    # activations (or let XLA fuse this cast into the upstream producer) so
    # the cast does not become an extra HBM pass of its own.
    cdt = jnp.bfloat16
    reps = representations.astype(cdt)
    prob = probes.astype(cdt)
    w1a = w1[:s].astype(cdt)                      # (S, H)
    w1b = w1[s:].astype(cdt)                      # (P, H)
    w2c = w2.astype(cdt)                          # (H, L)
    b1r = b1.reshape(1, hdim).astype(jnp.float32)
    b2r = b2.reshape(1, l).astype(jnp.float32)
    # Note: S/P are left un-padded here; the weight blocks use full-extent
    # contraction dims, and padding the activations in the wrapper would add
    # back exactly the extra HBM pass we just removed.

    # Row tile: large tiles amortize the ~0.35us per-grid-step overhead; when
    # N allows, force >=2 grid blocks so v7x's two TensorCores both get work.
    tn = min(tile_n, n)
    if n >= 16:
        tn = min(tn, _round_up8(pl.cdiv(n, 2)))
    if tn < n:
        tn = max(8, (tn // 8) * 8)                # (8,128) sublane rule
    grid = (pl.cdiv(n, tn),)
    depth = 3 if grid[0] > 2 else 2               # extra buffering only when useful

    cost = pl.CostEstimate(
        flops=2 * n * (s + p) * hdim + 2 * n * hdim * l,
        transcendentals=n * hdim,                 # sigmoid
        bytes_accessed=(2 * (n * s + n * p + (s + p) * hdim + hdim * l)   # bf16
                        + 4 * (hdim + l)                                   # f32 biases
                        + 4 * n * l),                                      # f32 logits
    )

    logits = pl.pallas_call(
        _classifier_kernel,
        out_shape=jax.ShapeDtypeStruct((n, l), jnp.float32),
        grid=grid,
        in_specs=[
            # Activations: tiled over the batch (pipelined / multi-buffered).
            _spec((tn, s), lambda i: (i, 0), depth),
            _spec((tn, p), lambda i: (i, 0), depth),
            # Weights & biases: constant block -> stay VMEM-resident.
            pl.BlockSpec((s, hdim), lambda i: (0, 0)),
            pl.BlockSpec((p, hdim), lambda i: (0, 0)),
            pl.BlockSpec((1, hdim), lambda i: (0, 0)),
            pl.BlockSpec((hdim, l), lambda i: (0, 0)),
            pl.BlockSpec((1, l), lambda i: (0, 0)),
        ],
        out_specs=_spec((tn, l), lambda i: (i, 0), depth),
        compiler_params=pltpu.CompilerParams(
            # Batch tiles are independent -> shard across TCs on v7x megacore.
            dimension_semantics=("parallel",),
            # 32 MiB fits v7x's 64 MiB/TC VMEM with headroom; raise together
            # with tile_n on v5e/v6e (128 MiB physical) for large K/H.
            vmem_limit_bytes=32 * 1024 * 1024,
        ),
        cost_estimate=cost,
    )(reps, prob, w1a, w1b, b1r, w2c, b2r)

    # log_softmax is monotone per-row, so argmax(log_softmax(logits)) == argmax(logits).
    predicted = jnp.argmax(logits, axis=1).astype(jnp.int32)
    return logits, predicted


def init_params(key, in_dim, hidden_dim, nlabels):
    """Deterministic init mimicking nn.Linear (uniform +/- 1/sqrt(fan_in))."""
    k1, k2, k3, k4 = jax.random.split(key, 4)
    bound1 = 1.0 / jnp.sqrt(in_dim)
    bound2 = 1.0 / jnp.sqrt(hidden_dim)
    w1 = jax.random.uniform(k1, (in_dim, hidden_dim), jnp.float32, -bound1, bound1)
    b1 = jax.random.uniform(k2, (hidden_dim,), jnp.float32, -bound1, bound1)
    w2 = jax.random.uniform(k3, (hidden_dim, nlabels), jnp.float32, -bound2, bound2)
    b2 = jax.random.uniform(k4, (nlabels,), jnp.float32, -bound2, bound2)
    return w1, b1, w2, b2


if __name__ == "__main__":
    # N = batch, S = dialogue_rep_dim, P = probe_dim, H = hidden_dim, L = nlabels
    N, S, P, H, L = 8, 16, 16, 32, 4

    key = jax.random.PRNGKey(0)
    k_rep, k_probe, k_param = jax.random.split(key, 3)
    representations = jax.random.normal(k_rep, (N, S), jnp.float32)
    probes = jax.random.normal(k_probe, (N, P), jnp.float32)
    w1, b1, w2, b2 = init_params(k_param, S + P, H, L)

    logits, predicted = deeper_classifier_forward(
        representations, probes, w1, b1, w2, b2)
    jax.block_until_ready((logits, predicted))
    assert logits.shape == (N, L) and predicted.shape == (N,)

    # Reference 1: same bf16-operand / f32-accumulation math (tight tolerance).
    repsb = representations.astype(jnp.bfloat16)
    probb = probes.astype(jnp.bfloat16)
    h_ref = jax.nn.sigmoid(
        jnp.dot(repsb, w1[:S].astype(jnp.bfloat16), preferred_element_type=jnp.float32)
        + jnp.dot(probb, w1[S:].astype(jnp.bfloat16), preferred_element_type=jnp.float32)
        + b1)
    logits_bf_ref = jnp.dot(h_ref.astype(jnp.bfloat16), w2.astype(jnp.bfloat16),
                            preferred_element_type=jnp.float32) + b2
    pred_bf_ref = jnp.argmax(jax.nn.log_softmax(logits_bf_ref, axis=1), axis=1)
    assert jnp.allclose(logits, logits_bf_ref, atol=1e-3, rtol=1e-3)
    assert jnp.array_equal(predicted, pred_bf_ref.astype(jnp.int32))

    # Reference 2: pure-f32 PyTorch-equivalent math (loose tolerance: bf16 MXU).
    x = jnp.concatenate([representations, probes], axis=1)
    logits_f32_ref = jax.nn.sigmoid(x @ w1 + b1) @ w2 + b2
    assert jnp.allclose(logits, logits_f32_ref, atol=5e-2, rtol=5e-2)

    print("KERNEL_OK")
</pallas_src>

<mosaic_0001>
module attributes {stable_mosaic.version = 11 : i64} {
  func.func @_classifier_kernel(%arg0: i32, %arg1: memref<8x16xbf16, #tpu.memory_space<vmem>>, %arg2: memref<8x16xbf16, #tpu.memory_space<vmem>>, %arg3: memref<16x32xbf16, #tpu.memory_space<vmem>>, %arg4: memref<16x32xbf16, #tpu.memory_space<vmem>>, %arg5: memref<1x32xf32, #tpu.memory_space<vmem>>, %arg6: memref<32x4xbf16, #tpu.memory_space<vmem>>, %arg7: memref<1x4xf32, #tpu.memory_space<vmem>>, %arg8: memref<8x4xf32, #tpu.memory_space<vmem>>) attributes {dimension_semantics = [#tpu.dimension_semantics<parallel>], iteration_bounds = array<i64: 1>, scalar_prefetch = 0 : i64, scratch_operands = 0 : i64, tpu.core_type = #tpu.core_type<tc>, window_params = [{transform_indices = @transform_0, window_bounds = array<i64: 8, 16>}, {transform_indices = @transform_1, window_bounds = array<i64: 8, 16>}, {pipeline_mode = #tpu.pipeline_mode<synchronous>, transform_indices = @transform_2, window_bounds = array<i64: 16, 32>}, {pipeline_mode = #tpu.pipeline_mode<synchronous>, transform_indices = @transform_3, window_bounds = array<i64: 16, 32>}, {pipeline_mode = #tpu.pipeline_mode<synchronous>, transform_indices = @transform_4, window_bounds = array<i64: 1, 32>}, {pipeline_mode = #tpu.pipeline_mode<synchronous>, transform_indices = @transform_5, window_bounds = array<i64: 32, 4>}, {pipeline_mode = #tpu.pipeline_mode<synchronous>, transform_indices = @transform_6, window_bounds = array<i64: 1, 4>}, {transform_indices = @transform_7, window_bounds = array<i64: 8, 4>}]} {
    %c0 = arith.constant 0 : index
    %c0_0 = arith.constant 0 : index
    %0 = vector.load %arg1[%c0, %c0_0] : memref<8x16xbf16, #tpu.memory_space<vmem>>, vector<8x16xbf16>
    %c0_1 = arith.constant 0 : index
    %c0_2 = arith.constant 0 : index
    %1 = vector.load %arg3[%c0_1, %c0_2] : memref<16x32xbf16, #tpu.memory_space<vmem>>, vector<16x32xbf16>
    %cst = arith.constant dense<0.000000e+00> : vector<8x32xf32>
    %2 = tpu.matmul %0, %1, %cst {dimension_numbers = #tpu.dot_dimension_numbers<[1], [0], [0], [1], [0, 0, 1, 1], [], []>} : vector<8x16xbf16>, vector<16x32xbf16>, vector<8x32xf32> -> vector<8x32xf32>
    %c0_3 = arith.constant 0 : index
    %c0_4 = arith.constant 0 : index
    %3 = vector.load %arg2[%c0_3, %c0_4] : memref<8x16xbf16, #tpu.memory_space<vmem>>, vector<8x16xbf16>
    %c0_5 = arith.constant 0 : index
    %c0_6 = arith.constant 0 : index
    %4 = vector.load %arg4[%c0_5, %c0_6] : memref<16x32xbf16, #tpu.memory_space<vmem>>, vector<16x32xbf16>
    %cst_7 = arith.constant dense<0.000000e+00> : vector<8x32xf32>
    %5 = tpu.matmul %3, %4, %cst_7 {dimension_numbers = #tpu.dot_dimension_numbers<[1], [0], [0], [1], [0, 0, 1, 1], [], []>} : vector<8x16xbf16>, vector<16x32xbf16>, vector<8x32xf32> -> vector<8x32xf32>
    %6 = arith.addf %2, %5 : vector<8x32xf32>
    %c0_8 = arith.constant 0 : index
    %c0_9 = arith.constant 0 : index
    %7 = vector.load %arg5[%c0_8, %c0_9] : memref<1x32xf32, #tpu.memory_space<vmem>>, vector<1x32xf32>
    %8 = vector.broadcast %7 : vector<1x32xf32> to vector<8x32xf32>
    %9 = arith.addf %6, %8 : vector<8x32xf32>
    %10 = arith.negf %9 : vector<8x32xf32>
    %11 = math.exp %10 : vector<8x32xf32>
    %cst_10 = arith.constant 1.000000e+00 : f32
    %12 = vector.broadcast %cst_10 : f32 to vector<8x32xf32>
    %13 = arith.addf %12, %11 : vector<8x32xf32>
    %14 = arith.divf %12, %13 : vector<8x32xf32>
    %15 = arith.truncf %14 : vector<8x32xf32> to vector<8x32xbf16>
    %c0_11 = arith.constant 0 : index
    %c0_12 = arith.constant 0 : index
    %16 = vector.load %arg6[%c0_11, %c0_12] : memref<32x4xbf16, #tpu.memory_space<vmem>>, vector<32x4xbf16>
    %cst_13 = arith.constant dense<0.000000e+00> : vector<8x4xf32>
    %17 = tpu.matmul %15, %16, %cst_13 {dimension_numbers = #tpu.dot_dimension_numbers<[1], [0], [0], [1], [0, 0, 1, 1], [], []>} : vector<8x32xbf16>, vector<32x4xbf16>, vector<8x4xf32> -> vector<8x4xf32>
    %c0_14 = arith.constant 0 : index
    %c0_15 = arith.constant 0 : index
    %18 = vector.load %arg7[%c0_14, %c0_15] : memref<1x4xf32, #tpu.memory_space<vmem>>, vector<1x4xf32>
    %19 = vector.broadcast %18 : vector<1x4xf32> to vector<8x4xf32>
    %20 = arith.addf %17, %19 : vector<8x4xf32>
    %c0_16 = arith.constant 0 : index
    %c0_17 = arith.constant 0 : index
    %21 = vector.load %arg8[%c0_16, %c0_17] : memref<8x4xf32, #tpu.memory_space<vmem>>, vector<8x4xf32>
    tpu.vector_store %arg8[%c0_16, %c0_17], %20 {strides = array<i32>} : memref<8x4xf32, #tpu.memory_space<vmem>>, vector<8x4xf32>,
    return
  }
  func.func @transform_0(%arg0: i32) -> (i32, i32) {
    %c0_i32 = arith.constant 0 : i32
    %c0_i32_0 = arith.constant 0 : i32
    return %arg0, %c0_i32 : i32, i32
  }
  func.func @transform_1(%arg0: i32) -> (i32, i32) {
    %c0_i32 = arith.constant 0 : i32
    %c0_i32_0 = arith.constant 0 : i32
    return %arg0, %c0_i32 : i32, i32
  }
  func.func @transform_2(%arg0: i32) -> (i32, i32) {
    %c0_i32 = arith.constant 0 : i32
    %c0_i32_0 = arith.constant 0 : i32
    %c0_i32_1 = arith.constant 0 : i32
    return %c0_i32, %c0_i32_0 : i32, i32
  }
  func.func @transform_3(%arg0: i32) -> (i32, i32) {
    %c0_i32 = arith.constant 0 : i32
    %c0_i32_0 = arith.constant 0 : i32
    %c0_i32_1 = arith.constant 0 : i32
    return %c0_i32, %c0_i32_0 : i32, i32
  }
  func.func @transform_4(%arg0: i32) -> (i32, i32) {
    %c0_i32 = arith.constant 0 : i32
    %c0_i32_0 = arith.constant 0 : i32
    %c0_i32_1 = arith.constant 0 : i32
    return %c0_i32, %c0_i32_0 : i32, i32
  }
  func.func @transform_5(%arg0: i32) -> (i32, i32) {
    %c0_i32 = arith.constant 0 : i32
    %c0_i32_0 = arith.constant 0 : i32
    %c0_i32_1 = arith.constant 0 : i32
    return %c0_i32, %c0_i32_0 : i32, i32
  }
  func.func @transform_6(%arg0: i32) -> (i32, i32) {
    %c0_i32 = arith.constant 0 : i32
    %c0_i32_0 = arith.constant 0 : i32
    %c0_i32_1 = arith.constant 0 : i32
    return %c0_i32, %c0_i32_0 : i32, i32
  }
  func.func @transform_7(%arg0: i32) -> (i32, i32) {
    %c0_i32 = arith.constant 0 : i32
    %c0_i32_0 = arith.constant 0 : i32
    return %arg0, %c0_i32 : i32, i32
  }
}

</mosaic_0001>

<bundles_post_ra>
// kernel: deeper_classifier_forward.1
= control target key start
LH: loop header
LB: loop body
LE: loop exit
PB: predicated region body
PF: predicated region fallthrough
CT: control target
= control target key end

     0   :  { %v267_v0 = vmov 0.0   ;;  %vm268_vm0 = vmmov 0   ;;  %vm39_vm1 = vcmask 130048   ;;  %vm170_vm2 = vcmask 261120   ;;  %s336_s3 = inlined_call_operand.vmem [shape: bf16[16,32], index: 3, kind: input, shape index: {}]   ;;  %s337_s2 = inlined_call_operand.vmem [shape: bf16[16,32], index: 2, kind: input, shape index: {}]   ;;  %s338_s1 = inlined_call_operand.vmem [shape: bf16[8,16], index: 1, kind: input, shape index: {}]   ;;  %s339_s0 = inlined_call_operand.vmem [shape: bf16[8,16], index: 0, kind: input, shape index: {}]   ;;  %s340_s5 = inlined_call_operand.vmem [shape: bf16[32,4], index: 5, kind: input, shape index: {}]   ;;  %s341_s4 = inlined_call_operand.vmem [shape: f32[1,32], index: 4, kind: input, shape index: {}]   ;;  %s342_s6 = inlined_call_operand.vmem [shape: f32[1,4], index: 6, kind: input, shape index: {}]   ;;  %s343_s7 = inlined_call_operand.vmem [shape: f32[8,4], index: 7, kind: output, shape index: {}]  }
   0x1   :  { %237 = vmatprep.subr.bf16.mxu0 %v267_v0  ;;  %243 = vmatprep.subr.bf16.mxu1 %v267_v0  ;;  %v259_v1 = vld [vmem:[%s336_s3] sm:$0xff]   ;;  %v261_v5 = vld [vmem:[%s340_s5 + $0x8] sm:$0xff]   ;;  %vm214_vm3 = vcmask 31744  }
   0x2   :  { %v260_v2 = vld [vmem:[%s337_s2] sm:$0xff]   ;;  %239 = vmatprep.mubr.msk.bf16.mxu0 %vm268_vm0, %v267_v0  ;;  %245 = vmatprep.mubr.msk.bf16.mxu1 %vm268_vm0, %v267_v0 }
   0x3   :  { %238 = vmatpush3.bf16.msra.mxu0 %v259_v1  ;;  %v30_v3 = vld [vmem:[%s338_s1] sm:$0xf]  ;;  %244 = vmatpush3.bf16.msra.mxu1 %v260_v2 }
   0x4   :  { %v27_v4 = vld [vmem:[%s339_s0] sm:$0xf]  ;;  %249 = vmatprep.subr.bf16.mxu0 %v267_v0 }
   0x5   :  { %v262_v6 = vld [vmem:[%s340_s5] sm:$0xff]  }
   0x6   :  { %240 = vmatmul.mubr.msk.bf16.vlgmr.msra.gmra.mxu0 %vm39_vm1, %v30_v3  ;;  %246 = vmatmul.mubr.msk.bf16.vlgmr.msra.gmra.mxu1 %vm39_vm1, %v27_v4  ;;  %v224_v9 = vld [vmem:[%s341_s4] ss:$0 sm:$0xff] }
   0x7   :  { %253 = vmatprep.mubr.msk.bf16.mxu0 %vm268_vm0, %v267_v0  ;;  %250 = vmatpush3.bf16.msra.mxu0 %v261_v5  ;;  %v226_v23 = vld [vmem:[%s342_s6] ss:$0 sm:$0xff] }
   0x8   :  { %251 = vmatprep.subr.bf16.mxu0 %v267_v0 }
   0xb   :  { %252 = vmatpush3.bf16.msra.mxu0 %v262_v6 }
  0xc6   :  { %v77_v7 = vpop.f32.mrf.mxu0  ;;  %v126_v8 = vpop.f32.mrf.mxu1 }
  0xc7   :  { %v127_v10 = vadd.f32 %v126_v8, %v77_v7 }
  0xc8   :  { %v241_v11 = vpop.f32.mrf.mxu0  ;;  %v247_v12 = vpop.f32.mrf.mxu1 }
  0xc9   :  { %v139_v13 = vadd.f32 %v224_v9, %v127_v10 }
  0xca   :  { %v80_v14 = vpop.f32.mrf.mxu0  ;;  %v129_v15 = vpop.f32.mrf.mxu1 }
  0xcb   :  { %v225_v16 = vmul.f32 -1.442695, %v139_v13 }
  0xcc   :  { %v242_v17 = vpop.f32.mrf.mxu0  ;;  %v248_v18 = vpop.f32.mrf.mxu1 }
  0xcd   :  { %263 = vpow2.f32 %v225_v16 }
  0xda   :  { %v264_v19 = vpop.eup %263 }
  0xdb   :  { %v143_v20 = vadd.f32 1.0, %v264_v19 }
  0xdd   :  { %265 = vrcp.f32 %v143_v20 }
  0xea   :  { %v266_v21 = vpop.eup %265 }
  0xeb   :  { %v146_v22 = vpack.c.bf16 %v266_v21, %v266_v21 }
  0xed   :  { %254 = vmatmul.mubr.msk.bf16.vlgmr.msra.gmra.mxu0 %vm170_vm2, %v146_v22 }
 0x1ad   :  { %v208_v24 = vpop.f32.mrf.mxu0 }
 0x1ae   :  { %v209_v25 = vadd.f32 %v226_v23, %v208_v24 }
 0x1af   :  { %v255_v26 = vpop.f32.mrf.mxu0 }
 0x1b0   :  { %215 = vst.msk [vmem:[%s343_s7] sm:$0xff] %vm214_vm3, %v209_v25 }
 0x1b1   :  { %v211_v27 = vpop.f32.mrf.mxu0 }
 0x1b3   :  { %v256_v28 = vpop.f32.mrf.mxu0 }

</bundles_post_ra>
